<compile_context>
chip_gen: v5e
topology: v5e:2x2
jax: 0.10.0
libtpu: 0.0.40
codegen_flags: <defaults>
</compile_context>

<pallas_src>
import jax
import jax.numpy as jnp
from jax.experimental import pallas as pl
from jax.experimental.pallas import tpu as pltpu

_LANE = 128  # TPU vreg lane width


def _discriminator_kernel(x_ref, w1_ref, b1_ref, w2_ref, b2_ref, w3_ref, b3_ref, o_ref):
    """(Linear -> Sigmoid) x 3 on one batch tile. bf16 MXU matmuls, f32 accumulation."""
    x = x_ref[...]

    h1 = jax.nn.sigmoid(
        jnp.dot(x.astype(jnp.bfloat16), w1_ref[...].astype(jnp.bfloat16),
                preferred_element_type=jnp.float32) + b1_ref[...]
    )
    h2 = jax.nn.sigmoid(
        jnp.dot(h1.astype(jnp.bfloat16), w2_ref[...].astype(jnp.bfloat16),
                preferred_element_type=jnp.float32) + b2_ref[...]
    )
    out = jax.nn.sigmoid(
        jnp.dot(h2.astype(jnp.bfloat16), w3_ref[...].astype(jnp.bfloat16),
                preferred_element_type=jnp.float32) + b3_ref[...]
    )
    o_ref[...] = out.astype(o_ref.dtype)


def _round_up(n, m):
    return (n + m - 1) // m * m


def discriminator_forward(x, params, *, tile_b=512):
    """Run the Discriminator forward pass via a batch-tiled pallas_call.

    x:      (batch, input_size) float32
    params: dict with w1 (in,hid), b1 (1,hid), w2 (hid,hid), b2 (1,hid),
            w3 (hid,out), b3 (1,out)
    """
    w1, b1 = params["w1"], params["b1"]
    w2, b2 = params["w2"], params["b2"]
    w3, b3 = params["w3"], params["b3"]

    batch, in_size = x.shape
    hid = w1.shape[1]
    out_size = w3.shape[1]

    # ---- Pad feature dims to lane width (128) for lane-dense vregs / unmasked stores.
    in_p = _round_up(in_size, _LANE)
    hid_p = _round_up(hid, _LANE)
    out_p = _round_up(out_size, _LANE)

    x_p = jnp.pad(x, ((0, 0), (0, in_p - in_size)))
    w1_p = jnp.pad(w1, ((0, in_p - in_size), (0, hid_p - hid)))
    b1_p = jnp.pad(b1, ((0, 0), (0, hid_p - hid)))
    w2_p = jnp.pad(w2, ((0, hid_p - hid), (0, hid_p - hid)))
    b2_p = jnp.pad(b2, ((0, 0), (0, hid_p - hid)))
    w3_p = jnp.pad(w3, ((0, hid_p - hid), (0, out_p - out_size)))
    b3_p = jnp.pad(b3, ((0, 0), (0, out_p - out_size)))

    # ---- Batch tile: multiple of 8 (sublane), capped at tile_b; pad batch to a multiple.
    tb = min(_round_up(batch, 8), tile_b)
    padded_b = _round_up(batch, tb)
    if padded_b != batch:
        x_p = jnp.pad(x_p, ((0, padded_b - batch), (0, 0)))
    grid = (padded_b // tb,)

    # Advisory cost hint so XLA schedules surrounding GAN ops sensibly.
    flops = 2 * padded_b * (in_p * hid_p + hid_p * hid_p + hid_p * out_p)
    transcendentals = padded_b * (2 * hid_p + out_p)
    bytes_accessed = 4 * (
        padded_b * in_p + padded_b * out_p
        + in_p * hid_p + hid_p * hid_p + hid_p * out_p + 2 * hid_p + out_p
    )

    out = pl.pallas_call(
        _discriminator_kernel,
        out_shape=jax.ShapeDtypeStruct((padded_b, out_p), x.dtype),
        grid=grid,
        in_specs=[
            pl.BlockSpec((tb, in_p), lambda i: (i, 0)),          # x: tiled over batch
            pl.BlockSpec(w1_p.shape, lambda i: (0, 0)),          # weights/biases: resident
            pl.BlockSpec(b1_p.shape, lambda i: (0, 0)),
            pl.BlockSpec(w2_p.shape, lambda i: (0, 0)),
            pl.BlockSpec(b2_p.shape, lambda i: (0, 0)),
            pl.BlockSpec(w3_p.shape, lambda i: (0, 0)),
            pl.BlockSpec(b3_p.shape, lambda i: (0, 0)),
        ],
        out_specs=pl.BlockSpec((tb, out_p), lambda i: (i, 0)),
        compiler_params=pltpu.CompilerParams(
            dimension_semantics=("parallel",),
        ),
        cost_estimate=pl.CostEstimate(
            flops=flops,
            transcendentals=transcendentals,
            bytes_accessed=bytes_accessed,
        ),
    )(x_p, w1_p, b1_p, w2_p, b2_p, w3_p, b3_p)

    return out[:batch, :out_size]


def init_params(key, input_size, hidden_size, output_size):
    """Deterministic init mimicking nn.Linear's uniform(-1/sqrt(fan_in), 1/sqrt(fan_in))."""
    ks = jax.random.split(key, 6)

    def linear(kw, kb, fan_in, fan_out):
        bound = 1.0 / jnp.sqrt(fan_in)
        w = jax.random.uniform(kw, (fan_in, fan_out), jnp.float32, -bound, bound)
        b = jax.random.uniform(kb, (1, fan_out), jnp.float32, -bound, bound)
        return w, b

    w1, b1 = linear(ks[0], ks[1], input_size, hidden_size)
    w2, b2 = linear(ks[2], ks[3], hidden_size, hidden_size)
    w3, b3 = linear(ks[4], ks[5], hidden_size, output_size)
    return {"w1": w1, "b1": b1, "w2": w2, "b2": b2, "w3": w3, "b3": b3}


def reference_forward(x, p):
    """Pure-JAX f32 reference of the same forward pass."""
    h1 = jax.nn.sigmoid(x @ p["w1"] + p["b1"])
    h2 = jax.nn.sigmoid(h1 @ p["w2"] + p["b2"])
    return jax.nn.sigmoid(h2 @ p["w3"] + p["b3"])


if __name__ == "__main__":
    input_size, hidden_size, output_size = 16, 32, 1
    key = jax.random.PRNGKey(0)
    kx, kp, kx2 = jax.random.split(key, 3)
    params = init_params(kp, input_size, hidden_size, output_size)

    # Case 1: small single-tile batch.
    batch = 8
    x = jax.random.normal(kx, (batch, input_size), dtype=jnp.float32)
    out = jax.block_until_ready(discriminator_forward(x, params))
    ref = reference_forward(x, params)
    assert out.shape == (batch, output_size)
    # bf16 matmul inputs + f32 accumulation vs pure-f32 reference -> loose tolerance.
    assert jnp.allclose(out, ref, atol=2e-2, rtol=2e-2)

    # Case 2: multi-step grid (exercises batch tiling / pipelining path).
    batch2 = 48
    x2 = jax.random.normal(kx2, (batch2, input_size), dtype=jnp.float32)
    out2 = jax.block_until_ready(discriminator_forward(x2, params, tile_b=16))
    ref2 = reference_forward(x2, params)
    assert out2.shape == (batch2, output_size)
    assert jnp.allclose(out2, ref2, atol=2e-2, rtol=2e-2)

    print("KERNEL_OK")
</pallas_src>

<mosaic_0001>
module attributes {stable_mosaic.version = 11 : i64} {
  func.func @_discriminator_kernel(%arg0: i32, %arg1: memref<8x128xf32, #tpu.memory_space<vmem>>, %arg2: memref<128x128xf32, #tpu.memory_space<vmem>>, %arg3: memref<1x128xf32, #tpu.memory_space<vmem>>, %arg4: memref<128x128xf32, #tpu.memory_space<vmem>>, %arg5: memref<1x128xf32, #tpu.memory_space<vmem>>, %arg6: memref<128x128xf32, #tpu.memory_space<vmem>>, %arg7: memref<1x128xf32, #tpu.memory_space<vmem>>, %arg8: memref<8x128xf32, #tpu.memory_space<vmem>>) attributes {dimension_semantics = [#tpu.dimension_semantics<parallel>], iteration_bounds = array<i64: 1>, scalar_prefetch = 0 : i64, scratch_operands = 0 : i64, tpu.core_type = #tpu.core_type<tc>, window_params = [{transform_indices = @transform_0, window_bounds = array<i64: 8, 128>}, {pipeline_mode = #tpu.pipeline_mode<synchronous>, transform_indices = @transform_1, window_bounds = array<i64: 128, 128>}, {pipeline_mode = #tpu.pipeline_mode<synchronous>, transform_indices = @transform_2, window_bounds = array<i64: 1, 128>}, {pipeline_mode = #tpu.pipeline_mode<synchronous>, transform_indices = @transform_3, window_bounds = array<i64: 128, 128>}, {pipeline_mode = #tpu.pipeline_mode<synchronous>, transform_indices = @transform_4, window_bounds = array<i64: 1, 128>}, {pipeline_mode = #tpu.pipeline_mode<synchronous>, transform_indices = @transform_5, window_bounds = array<i64: 128, 128>}, {pipeline_mode = #tpu.pipeline_mode<synchronous>, transform_indices = @transform_6, window_bounds = array<i64: 1, 128>}, {transform_indices = @transform_7, window_bounds = array<i64: 8, 128>}]} {
    %c0 = arith.constant 0 : index
    %c0_0 = arith.constant 0 : index
    %0 = vector.load %arg1[%c0, %c0_0] : memref<8x128xf32, #tpu.memory_space<vmem>>, vector<8x128xf32>
    %1 = arith.truncf %0 : vector<8x128xf32> to vector<8x128xbf16>
    %c0_1 = arith.constant 0 : index
    %c0_2 = arith.constant 0 : index
    %2 = vector.load %arg2[%c0_1, %c0_2] : memref<128x128xf32, #tpu.memory_space<vmem>>, vector<128x128xf32>
    %3 = arith.truncf %2 : vector<128x128xf32> to vector<128x128xbf16>
    %cst = arith.constant dense<0.000000e+00> : vector<8x128xf32>
    %4 = tpu.matmul %1, %3, %cst {dimension_numbers = #tpu.dot_dimension_numbers<[1], [0], [0], [1], [0, 0, 1, 1], [], []>} : vector<8x128xbf16>, vector<128x128xbf16>, vector<8x128xf32> -> vector<8x128xf32>
    %c0_3 = arith.constant 0 : index
    %c0_4 = arith.constant 0 : index
    %5 = vector.load %arg3[%c0_3, %c0_4] : memref<1x128xf32, #tpu.memory_space<vmem>>, vector<1x128xf32>
    %6 = vector.broadcast %5 : vector<1x128xf32> to vector<8x128xf32>
    %7 = arith.addf %4, %6 : vector<8x128xf32>
    %8 = arith.negf %7 : vector<8x128xf32>
    %9 = math.exp %8 : vector<8x128xf32>
    %cst_5 = arith.constant 1.000000e+00 : f32
    %10 = vector.broadcast %cst_5 : f32 to vector<8x128xf32>
    %11 = arith.addf %10, %9 : vector<8x128xf32>
    %12 = arith.divf %10, %11 : vector<8x128xf32>
    %13 = arith.truncf %12 : vector<8x128xf32> to vector<8x128xbf16>
    %c0_6 = arith.constant 0 : index
    %c0_7 = arith.constant 0 : index
    %14 = vector.load %arg4[%c0_6, %c0_7] : memref<128x128xf32, #tpu.memory_space<vmem>>, vector<128x128xf32>
    %15 = arith.truncf %14 : vector<128x128xf32> to vector<128x128xbf16>
    %cst_8 = arith.constant dense<0.000000e+00> : vector<8x128xf32>
    %16 = tpu.matmul %13, %15, %cst_8 {dimension_numbers = #tpu.dot_dimension_numbers<[1], [0], [0], [1], [0, 0, 1, 1], [], []>} : vector<8x128xbf16>, vector<128x128xbf16>, vector<8x128xf32> -> vector<8x128xf32>
    %c0_9 = arith.constant 0 : index
    %c0_10 = arith.constant 0 : index
    %17 = vector.load %arg5[%c0_9, %c0_10] : memref<1x128xf32, #tpu.memory_space<vmem>>, vector<1x128xf32>
    %18 = vector.broadcast %17 : vector<1x128xf32> to vector<8x128xf32>
    %19 = arith.addf %16, %18 : vector<8x128xf32>
    %20 = arith.negf %19 : vector<8x128xf32>
    %21 = math.exp %20 : vector<8x128xf32>
    %cst_11 = arith.constant 1.000000e+00 : f32
    %22 = vector.broadcast %cst_11 : f32 to vector<8x128xf32>
    %23 = arith.addf %22, %21 : vector<8x128xf32>
    %24 = arith.divf %22, %23 : vector<8x128xf32>
    %25 = arith.truncf %24 : vector<8x128xf32> to vector<8x128xbf16>
    %c0_12 = arith.constant 0 : index
    %c0_13 = arith.constant 0 : index
    %26 = vector.load %arg6[%c0_12, %c0_13] : memref<128x128xf32, #tpu.memory_space<vmem>>, vector<128x128xf32>
    %27 = arith.truncf %26 : vector<128x128xf32> to vector<128x128xbf16>
    %cst_14 = arith.constant dense<0.000000e+00> : vector<8x128xf32>
    %28 = tpu.matmul %25, %27, %cst_14 {dimension_numbers = #tpu.dot_dimension_numbers<[1], [0], [0], [1], [0, 0, 1, 1], [], []>} : vector<8x128xbf16>, vector<128x128xbf16>, vector<8x128xf32> -> vector<8x128xf32>
    %c0_15 = arith.constant 0 : index
    %c0_16 = arith.constant 0 : index
    %29 = vector.load %arg7[%c0_15, %c0_16] : memref<1x128xf32, #tpu.memory_space<vmem>>, vector<1x128xf32>
    %30 = vector.broadcast %29 : vector<1x128xf32> to vector<8x128xf32>
    %31 = arith.addf %28, %30 : vector<8x128xf32>
    %32 = arith.negf %31 : vector<8x128xf32>
    %33 = math.exp %32 : vector<8x128xf32>
    %cst_17 = arith.constant 1.000000e+00 : f32
    %34 = vector.broadcast %cst_17 : f32 to vector<8x128xf32>
    %35 = arith.addf %34, %33 : vector<8x128xf32>
    %36 = arith.divf %34, %35 : vector<8x128xf32>
    %c0_18 = arith.constant 0 : index
    %c0_19 = arith.constant 0 : index
    %37 = vector.load %arg8[%c0_18, %c0_19] : memref<8x128xf32, #tpu.memory_space<vmem>>, vector<8x128xf32>
    tpu.vector_store %arg8[%c0_18, %c0_19], %36 {strides = array<i32>} : memref<8x128xf32, #tpu.memory_space<vmem>>, vector<8x128xf32>,
    return
  }
  func.func @transform_0(%arg0: i32) -> (i32, i32) {
    %c0_i32 = arith.constant 0 : i32
    %c0_i32_0 = arith.constant 0 : i32
    return %arg0, %c0_i32 : i32, i32
  }
  func.func @transform_1(%arg0: i32) -> (i32, i32) {
    %c0_i32 = arith.constant 0 : i32
    %c0_i32_0 = arith.constant 0 : i32
    %c0_i32_1 = arith.constant 0 : i32
    return %c0_i32, %c0_i32_0 : i32, i32
  }
  func.func @transform_2(%arg0: i32) -> (i32, i32) {
    %c0_i32 = arith.constant 0 : i32
    %c0_i32_0 = arith.constant 0 : i32
    %c0_i32_1 = arith.constant 0 : i32
    return %c0_i32, %c0_i32_0 : i32, i32
  }
  func.func @transform_3(%arg0: i32) -> (i32, i32) {
    %c0_i32 = arith.constant 0 : i32
    %c0_i32_0 = arith.constant 0 : i32
    %c0_i32_1 = arith.constant 0 : i32
    return %c0_i32, %c0_i32_0 : i32, i32
  }
  func.func @transform_4(%arg0: i32) -> (i32, i32) {
    %c0_i32 = arith.constant 0 : i32
    %c0_i32_0 = arith.constant 0 : i32
    %c0_i32_1 = arith.constant 0 : i32
    return %c0_i32, %c0_i32_0 : i32, i32
  }
  func.func @transform_5(%arg0: i32) -> (i32, i32) {
    %c0_i32 = arith.constant 0 : i32
    %c0_i32_0 = arith.constant 0 : i32
    %c0_i32_1 = arith.constant 0 : i32
    return %c0_i32, %c0_i32_0 : i32, i32
  }
  func.func @transform_6(%arg0: i32) -> (i32, i32) {
    %c0_i32 = arith.constant 0 : i32
    %c0_i32_0 = arith.constant 0 : i32
    %c0_i32_1 = arith.constant 0 : i32
    return %c0_i32, %c0_i32_0 : i32, i32
  }
  func.func @transform_7(%arg0: i32) -> (i32, i32) {
    %c0_i32 = arith.constant 0 : i32
    %c0_i32_0 = arith.constant 0 : i32
    return %arg0, %c0_i32 : i32, i32
  }
}

</mosaic_0001>

<bundles_post_ra>
// kernel: tpu_custom_call.1
= control target key start
LH: loop header
LB: loop body
LE: loop exit
PB: predicated region body
PF: predicated region fallthrough
CT: control target
= control target key end

     0   :  { %12 = vsyncpa [#allocation3], 0  ;;  %s516_s0 = inlined_call_operand.hbm [shape: f32[8,128], index: 0, kind: input, shape index: {}]   ;;  %s517_s1 = inlined_call_operand.hbm [shape: f32[128,128], index: 1, kind: input, shape index: {}]   ;;  %s518_s2 = inlined_call_operand.vmem [shape: f32[1,128], index: 2, kind: input, shape index: {}]   ;;  %s519_s3 = inlined_call_operand.hbm [shape: f32[128,128], index: 3, kind: input, shape index: {}]   ;;  %s520_s4 = inlined_call_operand.vmem [shape: f32[1,128], index: 4, kind: input, shape index: {}]   ;;  %s521_s5 = inlined_call_operand.hbm [shape: f32[128,128], index: 5, kind: input, shape index: {}]   ;;  %s522_s6 = inlined_call_operand.vmem [shape: f32[1,128], index: 6, kind: input, shape index: {}]   ;;  %s523_s7 = inlined_call_operand.hbm [shape: f32[8,128], index: 7, kind: output, shape index: {}]  }
   0x1   :  { %13 = vsyncpa [#allocation6], 0 }
   0x2   :  { %14 = vsyncpa [#allocation9], 0  ;;  %s31_s26 = sshll.u32 %s517_s1, 4  ;;  %s32_s26 = int_to_ptr.hbm [resolvable:$true] %s31_s26 }
   0x3   :  { %15 = vsyncpa [#allocation4], 0  ;;  %s445_s27 = smov [#allocation5]   ;;  %s21_s8 = sshll.u32 %s516_s0, 4  ;;  %s22_s8 = int_to_ptr.hbm [resolvable:$true] %s21_s8 }
   0x4   :  { %s33_s28 = sshll.u32 %s445_s27, 4  ;;  %s446_s9 = smov 128   ;;  %s34_s28 = int_to_ptr.vmem [resolvable:$true] %s33_s28 }
   0x5   :  { %s447_s10 = smov 8   ;;  %s448_s11 = smov [#allocation2]  }
   0x6   :  { %39 = dma.hbm_to_vmem [thread:$0]  %s32_s26, 2048, %s34_s28, [#allocation6], %s446_s9, %s446_s9, %s447_s10  }
   0x7   :  { %s23_s12 = sshll.u32 %s448_s11, 4  ;;  %s46_s15 = sshll.u32 %s519_s3, 4  ;;  %s24_s12 = int_to_ptr.vmem [resolvable:$true] %s23_s12  ;;  %s47_s15 = int_to_ptr.hbm [resolvable:$true] %s46_s15 }
   0x8   :  { %26 = dma.hbm_to_vmem [thread:$0]  %s22_s8, 128, %s24_s12, [#allocation3]  }
   0x9   :  { %s61_s17 = sshll.u32 %s521_s5, 4  ;;  %s449_s18 = smov [#allocation7]   ;;  %s62_s17 = int_to_ptr.hbm [resolvable:$true] %s61_s17 }
   0xa   :  { %s48_s19 = sshll.u32 %s449_s18, 4  ;;  %s450_s0 = smov [#allocation8]   ;;  %s49_s19 = int_to_ptr.vmem [resolvable:$true] %s48_s19 }
   0xb   :  { %54 = dma.hbm_to_vmem [thread:$0]  %s47_s15, 2048, %s49_s19, [#allocation6], %s446_s9, %s446_s9, %s447_s10  }
   0xc   :  { %s63_s20 = sshll.u32 %s450_s0, 4  ;;  %s64_s20 = int_to_ptr.vmem [resolvable:$true] %s63_s20 }
   0xd   :  { %69 = dma.hbm_to_vmem [thread:$0]  %s62_s17, 2048, %s64_s20, [#allocation9], %s446_s9, %s446_s9, %s447_s10  }
   0xe   :  { %437 = dma.done.wait [#allocation3], 128  }
   0xf   :  { %438 = vsyncadd [#allocation3], 4294967168 }
  0x10   :  { %439 = dma.done.wait [#allocation6], 4096  }
  0x11   :  { %440 = vsyncadd [#allocation6], 4294963200 }
  0x12   :  { %441 = dma.done.wait [#allocation9], 2048  }
  0x13   :  { %442 = vsyncadd [#allocation9], 4294965248  ;;  %v104_v0 = vld [vmem:[#allocation5 + $0x70] sm:$0xff]  ;;  %v105_v1 = vld [vmem:[#allocation5 + $0x78] sm:$0xff]  ;;  %s451_s23 = smov [#allocation10]  }
  0x14   :  { %v102_v2 = vld [vmem:[#allocation5 + $0x60] sm:$0xff]  ;;  %v113_v3 = vpack.c.bf16 %v105_v1, %v104_v0  ;;  %v103_v4 = vld [vmem:[#allocation5 + $0x68] sm:$0xff]  ;;  %v100_v6 = vld [vmem:[#allocation5 + $0x50] sm:$0xff]  ;;  %s278_s24 = sshll.u32 %s451_s23, 4  ;;  %s279_s24 = int_to_ptr.vmem [resolvable:$true] %s278_s24 }
  0x15   :  { %v112_v5 = vpack.c.bf16 %v103_v4, %v102_v2  ;;  %v101_v7 = vld [vmem:[#allocation5 + $0x58] sm:$0xff]  ;;  %v98_v9 = vld [vmem:[#allocation5 + $0x40] sm:$0xff]  ;;  %v99_v10 = vld [vmem:[#allocation5 + $0x48] sm:$0xff] }
  0x16   :  { %118 = vmatpush.bf16.msra.mxu0 %v113_v3  ;;  %v111_v8 = vpack.c.bf16 %v101_v7, %v100_v6  ;;  %v110_v11 = vpack.c.bf16 %v99_v10, %v98_v9  ;;  %v96_v12 = vld [vmem:[#allocation5 + $0x30] sm:$0xff]  ;;  %v97_v13 = vld [vmem:[#allocation5 + $0x38] sm:$0xff]  ;;  %v94_v15 = vld [vmem:[#allocation5 + $0x20] sm:$0xff] }
  0x17   :  { %v109_v14 = vpack.c.bf16 %v97_v13, %v96_v12  ;;  %v95_v16 = vld [vmem:[#allocation5 + $0x28] sm:$0xff]  ;;  %v92_v18 = vld [vmem:[#allocation5 + $0x10] sm:$0xff]  ;;  %v93_v19 = vld [vmem:[#allocation5 + $0x18] sm:$0xff] }
  0x18   :  { %v108_v17 = vpack.c.bf16 %v95_v16, %v94_v15  ;;  %v107_v20 = vpack.c.bf16 %v93_v19, %v92_v18  ;;  %v90_v21 = vld [vmem:[#allocation5] sm:$0xff]  ;;  %v91_v22 = vld [vmem:[#allocation5 + $0x8] sm:$0xff]  ;;  %v88_v24 = vld [vmem:[#allocation2] sm:$0xff] }
  0x19   :  { %v106_v23 = vpack.c.bf16 %v91_v22, %v90_v21  ;;  %v89_v25 = vpack.c.bf16 %v88_v24, %v88_v24  ;;  %v165_v26 = vld [vmem:[#allocation7 + $0x70] sm:$0xff]  ;;  %v166_v27 = vld [vmem:[#allocation7 + $0x78] sm:$0xff]  ;;  %v163_v29 = vld [vmem:[#allocation7 + $0x60] sm:$0xff] }
  0x1a   :  { %119 = vmatpush.bf16.msra.mxu0 %v112_v5  ;;  %v174_v28 = vpack.c.bf16 %v166_v27, %v165_v26  ;;  %v164_v30 = vld [vmem:[#allocation7 + $0x68] sm:$0xff]  ;;  %v161_v32 = vld [vmem:[#allocation7 + $0x50] sm:$0xff]  ;;  %v162_v33 = vld [vmem:[#allocation7 + $0x58] sm:$0xff] }
  0x1b   :  { %v173_v31 = vpack.c.bf16 %v164_v30, %v163_v29  ;;  %v172_v34 = vpack.c.bf16 %v162_v33, %v161_v32  ;;  %v159_v35 = vld [vmem:[#allocation7 + $0x40] sm:$0xff]  ;;  %v160_v36 = vld [vmem:[#allocation7 + $0x48] sm:$0xff]  ;;  %v157_v38 = vld [vmem:[#allocation7 + $0x30] sm:$0xff] }
  0x1c   :  { %179 = vmatpush.bf16.msra.mxu1 %v174_v28  ;;  %v171_v37 = vpack.c.bf16 %v160_v36, %v159_v35  ;;  %v158_v39 = vld [vmem:[#allocation7 + $0x38] sm:$0xff]  ;;  %v155_v41 = vld [vmem:[#allocation7 + $0x20] sm:$0xff]  ;;  %v156_v42 = vld [vmem:[#allocation7 + $0x28] sm:$0xff] }
  0x1d   :  { %v170_v40 = vpack.c.bf16 %v158_v39, %v157_v38  ;;  %v169_v43 = vpack.c.bf16 %v156_v42, %v155_v41  ;;  %v153_v44 = vld [vmem:[#allocation7 + $0x10] sm:$0xff]  ;;  %v154_v45 = vld [vmem:[#allocation7 + $0x18] sm:$0xff]  ;;  %v151_v47 = vld [vmem:[#allocation7] sm:$0xff] }
  0x1e   :  { %120 = vmatpush.bf16.msra.mxu0 %v111_v8  ;;  %v168_v46 = vpack.c.bf16 %v154_v45, %v153_v44  ;;  %v152_v48 = vld [vmem:[#allocation7 + $0x8] sm:$0xff]  ;;  %v302_v50 = vld [vmem:[%s518_s2] ss:$0 sm:$0xff]  ;;  %v226_v4 = vld [vmem:[#allocation8 + $0x70] sm:$0xff] }
  0x1f   :  { %v167_v49 = vpack.c.bf16 %v152_v48, %v151_v47  ;;  %v227_v5 = vld [vmem:[#allocation8 + $0x78] sm:$0xff]  ;;  %v224_v7 = vld [vmem:[#allocation8 + $0x60] sm:$0xff]  ;;  %v225_v8 = vld [vmem:[#allocation8 + $0x68] sm:$0xff] }
  0x20   :  { %180 = vmatpush.bf16.msra.mxu1 %v173_v31  ;;  %v235_v6 = vpack.c.bf16 %v227_v5, %v226_v4  ;;  %v234_v9 = vpack.c.bf16 %v225_v8, %v224_v7  ;;  %v222_v10 = vld [vmem:[#allocation8 + $0x50] sm:$0xff]  ;;  %v220_v13 = vld [vmem:[#allocation8 + $0x40] sm:$0xff]  ;;  %v213_v26 = vld [vmem:[#allocation8 + $0x8] sm:$0xff] }
  0x21   :  { %v218_v16 = vld [vmem:[#allocation8 + $0x30] sm:$0xff]  ;;  %v216_v19 = vld [vmem:[#allocation8 + $0x20] sm:$0xff]  ;;  %v303_v28 = vld [vmem:[%s520_s4] ss:$0 sm:$0xff] }
  0x22   :  { %121 = vmatpush.bf16.msra.mxu0 %v110_v11  ;;  %240 = vmatpush.bf16.msra.mxu2 %v235_v6  ;;  %v223_v11 = vld [vmem:[#allocation8 + $0x58] sm:$0xff]  ;;  %v214_v22 = vld [vmem:[#allocation8 + $0x10] sm:$0xff] }
  0x23   :  { %v233_v12 = vpack.c.bf16 %v223_v11, %v222_v10 }
  0x24   :  { %181 = vmatpush.bf16.msra.mxu1 %v172_v34 }
  0x26   :  { %122 = vmatpush.bf16.msra.mxu0 %v109_v14  ;;  %241 = vmatpush.bf16.msra.mxu2 %v234_v9  ;;  %v221_v14 = vld [vmem:[#allocation8 + $0x48] sm:$0xff] }
  0x27   :  { %v232_v15 = vpack.c.bf16 %v221_v14, %v220_v13 }
  0x28   :  { %182 = vmatpush.bf16.msra.mxu1 %v171_v37 }
  0x2a   :  { %123 = vmatpush.bf16.msra.mxu0 %v108_v17  ;;  %242 = vmatpush.bf16.msra.mxu2 %v233_v12  ;;  %v219_v17 = vld [vmem:[#allocation8 + $0x38] sm:$0xff] }
  0x2b   :  { %v231_v18 = vpack.c.bf16 %v219_v17, %v218_v16 }
  0x2c   :  { %183 = vmatpush.bf16.msra.mxu1 %v170_v40 }
  0x2e   :  { %124 = vmatpush.bf16.msra.mxu0 %v107_v20  ;;  %243 = vmatpush.bf16.msra.mxu2 %v232_v15  ;;  %v217_v20 = vld [vmem:[#allocation8 + $0x28] sm:$0xff] }
  0x2f   :  { %v230_v21 = vpack.c.bf16 %v217_v20, %v216_v19 }
  0x30   :  { %184 = vmatpush.bf16.msra.mxu1 %v169_v43 }
  0x32   :  { %125 = vmatpush.bf16.msra.mxu0 %v106_v23  ;;  %244 = vmatpush.bf16.msra.mxu2 %v231_v18  ;;  %v215_v23 = vld [vmem:[#allocation8 + $0x18] sm:$0xff] }
  0x33   :  { %v229_v24 = vpack.c.bf16 %v215_v23, %v214_v22 }
  0x34   :  { %185 = vmatpush.bf16.msra.mxu1 %v168_v46  ;;  %v304_v46 = vld [vmem:[%s522_s6] ss:$0 sm:$0xff]  ;;  %s280_s6 = sshll.u32 %s523_s7, 4  ;;  %s281_s6 = int_to_ptr.hbm [resolvable:$true] %s280_s6 }
  0x35   :  { %126 = vmatmul.bf16.vlgmr.msra.gmra.mxu0 %v89_v25  ;;  %v212_v25 = vld [vmem:[#allocation8] sm:$0xff] }
  0x36   :  { %245 = vmatpush.bf16.msra.mxu2 %v230_v21  ;;  %v228_v27 = vpack.c.bf16 %v213_v26, %v212_v25 }
  0x38   :  { %186 = vmatpush.bf16.msra.mxu1 %v167_v49 }
  0x3a   :  { %246 = vmatpush.bf16.msra.mxu2 %v229_v24 }
  0x3e   :  { %247 = vmatpush.bf16.msra.mxu2 %v228_v27 }
  0xb2   :  { %v127_v51 = vpop.f32.mrf.mxu0 }
  0xb3   :  { %v128_v52 = vadd.f32 %v302_v50, %v127_v51 }
  0xb5   :  { %v292_v53 = vmul.f32 -1.442695, %v128_v52 }
  0xb7   :  { %305 = vpow2.f32 %v292_v53 }
  0xba   :  { %v129_v54 = vpop.f32.mrf.mxu0 }
  0xbd   :  { %v306_v55 = vpop.eup %305 }
  0xbe   :  { %v134_v56 = vadd.f32 1.0, %v306_v55 }
  0xc0   :  { %307 = vrcp.f32 %v134_v56  ;;  %v146_v60 = vand.u32 2147483648, %v134_v56  ;;  %v144_v62 = vand.u32 2147483647, %v134_v56  ;;  %vm140_vm1 = vweird.f32 %v134_v56 }
  0xc2   :  { %v147_v0 = vor.u32 1.1754944e-38, %v146_v60  ;;  %vm145_vm3 = vcmp.eq.f32.partialorder %v144_v62, 8.507059e+37 }
  0xc6   :  { %v308_v57 = vpop.eup %307 }
  0xc7   :  { %v136_v58 = vmul.f32 %v308_v57, %v134_v56  ;;  %vm141_vm0 = vweird.f32 %v308_v57 }
  0xc8   :  { %vm142_vm2 = vmor %vm140_vm1, %vm141_vm0 }
  0xc9   :  { %v137_v59 = vsub.f32 1.0, %v136_v58 }
  0xcb   :  { %v138_v61 = vmul.f32 %v308_v57, %v137_v59 }
  0xcd   :  { %v139_v63 = vadd.f32 %v308_v57, %v138_v61 }
  0xcf   :  { %v143_v1 = vsel %vm142_vm2, %v308_v57, %v139_v63 }
  0xd0   :  { %v148_v2 = vsel %vm145_vm3, %v147_v0, %v143_v1 }
  0xd1   :  { %v150_v3 = vpack.c.bf16 %v148_v2, %v148_v2 }
  0xd3   :  { %187 = vmatmul.bf16.vlgmr.msra.gmra.mxu1 %v150_v3 }
 0x150   :  { %v188_v29 = vpop.f32.mrf.mxu1 }
 0x151   :  { %v189_v30 = vadd.f32 %v303_v28, %v188_v29 }
 0x153   :  { %v293_v31 = vmul.f32 -1.442695, %v189_v30 }
 0x155   :  { %309 = vpow2.f32 %v293_v31 }
 0x158   :  { %v190_v32 = vpop.f32.mrf.mxu1 }
 0x15b   :  { %v310_v33 = vpop.eup %309 }
 0x15c   :  { %v195_v34 = vadd.f32 1.0, %v310_v33 }
 0x15e   :  { %311 = vrcp.f32 %v195_v34  ;;  %v207_v38 = vand.u32 2147483648, %v195_v34  ;;  %v205_v40 = vand.u32 2147483647, %v195_v34  ;;  %vm201_vm5 = vweird.f32 %v195_v34 }
 0x160   :  { %v208_v42 = vor.u32 1.1754944e-38, %v207_v38  ;;  %vm206_vm7 = vcmp.eq.f32.partialorder %v205_v40, 8.507059e+37 }
 0x164   :  { %v312_v35 = vpop.eup %311 }
 0x165   :  { %v197_v36 = vmul.f32 %v312_v35, %v195_v34  ;;  %vm202_vm4 = vweird.f32 %v312_v35 }
 0x166   :  { %vm203_vm6 = vmor %vm201_vm5, %vm202_vm4 }
 0x167   :  { %v198_v37 = vsub.f32 1.0, %v197_v36 }
 0x169   :  { %v199_v39 = vmul.f32 %v312_v35, %v198_v37 }
 0x16b   :  { %v200_v41 = vadd.f32 %v312_v35, %v199_v39 }
 0x16d   :  { %v204_v43 = vsel %vm203_vm6, %v312_v35, %v200_v41 }
 0x16e   :  { %v209_v44 = vsel %vm206_vm7, %v208_v42, %v204_v43 }
 0x16f   :  { %v211_v45 = vpack.c.bf16 %v209_v44, %v209_v44 }
 0x171   :  { %248 = vmatmul.bf16.vlgmr.msra.gmra.mxu2 %v211_v45 }
 0x1f4   :  { %v249_v47 = vpop.f32.mrf.mxu2 }
 0x1f5   :  { %v250_v48 = vadd.f32 %v304_v46, %v249_v47 }
 0x1f7   :  { %v294_v49 = vmul.f32 -1.442695, %v250_v48 }
 0x1f9   :  { %313 = vpow2.f32 %v294_v49 }
 0x1fc   :  { %v251_v50 = vpop.f32.mrf.mxu2 }
 0x1ff   :  { %v314_v51 = vpop.eup %313 }
 0x200   :  { %v256_v52 = vadd.f32 1.0, %v314_v51 }
 0x202   :  { %315 = vrcp.f32 %v256_v52  ;;  %v268_v56 = vand.u32 2147483648, %v256_v52  ;;  %v266_v58 = vand.u32 2147483647, %v256_v52  ;;  %vm262_vm9 = vweird.f32 %v256_v52 }
 0x204   :  { %v269_v60 = vor.u32 1.1754944e-38, %v268_v56  ;;  %vm267_vm11 = vcmp.eq.f32.partialorder %v266_v58, 8.507059e+37 }
 0x208   :  { %v316_v53 = vpop.eup %315 }
 0x209   :  { %v258_v54 = vmul.f32 %v316_v53, %v256_v52  ;;  %vm263_vm8 = vweird.f32 %v316_v53 }
 0x20a   :  { %vm264_vm10 = vmor %vm262_vm9, %vm263_vm8 }
 0x20b   :  { %v259_v55 = vsub.f32 1.0, %v258_v54 }
 0x20d   :  { %v260_v57 = vmul.f32 %v316_v53, %v259_v55 }
 0x20f   :  { %v261_v59 = vadd.f32 %v316_v53, %v260_v57 }
 0x211   :  { %v265_v61 = vsel %vm264_vm10, %v316_v53, %v261_v59 }
 0x212   :  { %v270_v62 = vsel %vm267_vm11, %v269_v60, %v265_v61 }
 0x213   :  { %272 = vst [vmem:[#allocation10] sm:$0xff] %v270_v62 }
 0x214   :  { %283 = dma.vmem_to_hbm [thread:$0]  %s279_s24, 128, %s281_s6, [#allocation4]  }
 0x215   :  { %443 = dma.done.wait [#allocation4], 128  }
 0x216   :  { %444 = vsyncadd [#allocation4], 4294967168 }
 0x217   :  { %288 = vsyncpa [#allocation3], 1 }
 0x218   :  { %289 = vsyncpa [#allocation6], 1 }
 0x219   :  { %290 = vsyncpa [#allocation9], 1 }
 0x21a   :  { %291 = vsyncpa [#allocation4], 1 }

</bundles_post_ra>
